<compile_context>
chip_gen: v5e
topology: v5e:2x2
jax: 0.10.0
libtpu: 0.0.40
codegen_flags: <defaults>
</compile_context>

<pallas_src>
import functools

import numpy as np
import jax
import jax.numpy as jnp
from jax.experimental import pallas as pl
from jax.experimental.pallas import tpu as pltpu


def _round_up(a, b):
    return (a + b - 1) // b * b


def _quant4_matvec_kernel(xc_ref, q_ref, scales_ref, offset_ref, o_ref):
    """One (1, tile_n) output strip of the 4-bit vec-quant matvec.

    xc_ref:     (16, Rp) bf16  x coefficients: rows 2n / 2n+1 are the bf16
                hi / lo split of x[8r + n]  (n = nibble index 0..7).
    q_ref:      (Rp, Tn) int32 packed 4-bit weights (8 nibbles per word).
    scales_ref: (1, Tn)  f32
    offset_ref: (1, Tn)  f32   = bias - zeros * sum(x_used)  (folded on host)
    o_ref:      (1, Tn)  f32
    """
    q = q_ref[...]
    xc = xc_ref[...]
    acc = jnp.zeros((2, q.shape[1]), jnp.float32)
    # Unrolled over the 8 nibbles of each int32 word.  Nibble values 0..15 are
    # exact in bf16, so both MXU operands are bf16 (single-pass, deterministic)
    # while accumulation stays f32; the (2, Rp) LHS carries the hi/lo split of
    # the x coefficients so accuracy is ~f32 without extra dots.
    for n in range(8):
        if n == 0:
            nib = q & 0xF
        else:
            # Arithmetic shift on negative int32 is safe: the mask keeps only
            # the 4 wanted bits.
            nib = (q >> (4 * n)) & 0xF
        nib_bf = nib.astype(jnp.float32).astype(jnp.bfloat16)   # exact 0..15
        acc = acc + jnp.dot(xc[2 * n:2 * n + 2, :], nib_bf,
                            preferred_element_type=jnp.float32)
    # TODO(synk): merging the 8 dots into one K=8*Rp contraction (concatenated
    # nibble slab in VMEM) trades extra vst traffic for fewer MXU fill/drain
    # cycles; only worthwhile at very small R.  int8 MXU path (v6e only) and
    # pl.Buffered(3) on the qweight strip (v5e only) also left as follow-ups.
    o_ref[...] = scales_ref[...] * (acc[0:1, :] + acc[1:2, :]) + offset_ref[...]


def _choose_tile_n(n_pad, r_pad, requested=None):
    """Pick a 128-multiple tile width that divides n_pad (no over-padding)."""
    assert n_pad % 128 == 0
    k = n_pad // 128
    divisors = [d for d in range(1, k + 1) if k % d == 0]
    if requested is not None:
        req = max(1, requested // 128)
        cand = [d for d in divisors if d <= req]
        return 128 * max(cand) if cand else 128
    # Target ~1024 output lanes per tile, capped by a conservative VMEM budget
    # for the double-buffered int32 qweight strip (v7x: 64 MiB physical / TC)...
    vmem_budget = 24 * 1024 * 1024
    max_units_vmem = max(1, (vmem_budget // (2 * 4 * max(r_pad, 1))) // 128)
    cap = min(8, max_units_vmem)
    # ... and keep >= 2 grid steps whenever possible so the "parallel" axis can
    # shard across v7x's two TensorCores (harmless on v5e/v6e).
    feasible = [d for d in divisors if d <= cap and (k < 2 or k // d >= 2)]
    if not feasible:
        feasible = [1]
    return 128 * max(feasible)


def prepare_quant4_params(qweight, scales, zeros, bias, tile_n=None):
    """One-time static weight prep (padding / casts) -- keep out of forward."""
    R, N = qweight.shape
    r_pad = _round_up(R, 16)              # sublane-friendly K for the bf16 RHS
    n_pad = _round_up(N, 128)
    tn = _choose_tile_n(n_pad, r_pad, tile_n)

    qw = jnp.asarray(qweight, jnp.int32)
    sc = jnp.asarray(scales, jnp.float32).reshape(1, N)
    zr = jnp.asarray(zeros, jnp.float32).reshape(1, N)
    bi = jnp.asarray(bias, jnp.float32).reshape(1, N)
    # Zero-padding keeps padded output columns exactly 0 (sliced off anyway).
    qw = jnp.pad(qw, ((0, r_pad - R), (0, n_pad - N)))
    sc = jnp.pad(sc, ((0, 0), (0, n_pad - N)))
    zr = jnp.pad(zr, ((0, 0), (0, n_pad - N)))
    bi = jnp.pad(bi, ((0, 0), (0, n_pad - N)))
    return dict(qweight=qw, scales=sc, zeros=zr, bias=bi,
                R=R, r_pad=r_pad, outfeatures=N, n_pad=n_pad, tile_n=tn)


@functools.partial(
    jax.jit, static_argnames=("R", "r_pad", "outfeatures", "n_pad", "tile_n"))
def _quant4_forward(x, qw, scales, zeros, bias, *,
                    R, r_pad, outfeatures, n_pad, tile_n):
    orig_shape = x.shape
    dtype = x.dtype
    k_used = R * 8                                   # x entries actually consumed

    xf = jnp.asarray(x, jnp.float32).reshape(-1)[:k_used]
    x_nib = xf.reshape(R, 8).T                       # (8, R): row n = x[8r + n]
    x_hi = x_nib.astype(jnp.bfloat16)
    x_lo = (x_nib - x_hi.astype(jnp.float32)).astype(jnp.bfloat16)
    x_coef = jnp.stack([x_hi, x_lo], axis=1).reshape(16, R)     # rows 2n / 2n+1
    x_coef = jnp.pad(x_coef, ((0, 0), (0, r_pad - R)))          # zero K padding

    # Fold bias - zeros * sum(x_used) into one per-output offset strip.
    offset = bias - zeros * jnp.sum(xf)                          # (1, n_pad)

    est_vmem = (2 * r_pad * tile_n * 4        # qweight strip (double buffered)
                + 2 * 2 * tile_n * 4          # scales + offset strips
                + 2 * tile_n * 4              # output strip
                + 2 * 16 * r_pad * 2)         # x coefficients
    vmem_limit = int(min(max(2 * est_vmem, 32 << 20), 48 << 20))

    out = pl.pallas_call(
        _quant4_matvec_kernel,
        out_shape=jax.ShapeDtypeStruct((1, n_pad), jnp.float32),
        grid=(n_pad // tile_n,),
        in_specs=[
            pl.BlockSpec((16, r_pad), lambda j: (0, 0)),       # x coefficients
            pl.BlockSpec((r_pad, tile_n), lambda j: (0, j)),   # qweight strip
            pl.BlockSpec((1, tile_n), lambda j: (0, j)),       # scales strip
            pl.BlockSpec((1, tile_n), lambda j: (0, j)),       # offset strip
        ],
        out_specs=pl.BlockSpec((1, tile_n), lambda j: (0, j)),
        compiler_params=pltpu.CompilerParams(
            dimension_semantics=("parallel",),
            vmem_limit_bytes=vmem_limit),
    )(x_coef, qw, scales, offset)

    out = out[:, :outfeatures]
    return out.astype(dtype).reshape(orig_shape[:-1] + (outfeatures,))


def quant4_linear_prepared(x, params):
    """Forward pass using prepared (pre-padded) static weights."""
    lead = int(np.prod(x.shape[:-1])) if x.ndim > 1 else 1
    assert lead == 1, "Quant4Linear_dummy semantics require prod(x.shape[:-1]) == 1"
    assert params["R"] * 8 <= x.shape[-1]
    return _quant4_forward(x, params["qweight"], params["scales"],
                           params["zeros"], params["bias"],
                           R=params["R"], r_pad=params["r_pad"],
                           outfeatures=params["outfeatures"],
                           n_pad=params["n_pad"], tile_n=params["tile_n"])


def quant4_linear(x, qweight, scales, zeros, bias, tile_n=None):
    """Convenience one-shot wrapper (re-preps the static weights every call)."""
    return quant4_linear_prepared(
        x, prepare_quant4_params(qweight, scales, zeros, bias, tile_n))


def quant4_linear_ref_np(x, qweight, scales, zeros, bias):
    """Exact (float64, numpy) reference with the same semantics."""
    xf = np.asarray(x, dtype=np.float64)
    q = np.asarray(qweight)
    sc = np.asarray(scales, dtype=np.float64)
    zr = np.asarray(zeros, dtype=np.float64)
    b = np.asarray(bias, dtype=np.float64)
    R, No = q.shape
    nibs = np.stack([(q >> (4 * n)) & 0xF for n in range(8)], axis=1).astype(np.float64)
    W = sc[0][None, None, :] * nibs - zr[0][None, None, :]          # (R, 8, No)
    xv = xf.reshape(-1)[:R * 8].reshape(R, 8)
    y = b + np.einsum('rn,rno->o', xv, W)
    return y.astype(np.asarray(x).dtype).reshape(x.shape[:-1] + (No,))


if __name__ == "__main__":
    key = jax.random.PRNGKey(0)

    def run_case(infeatures, outfeatures, case_key):
        R = infeatures // 32 * 3            # matches the module's buffer registration
        kx, kq, ks, kz, kb = jax.random.split(case_key, 5)
        x = jax.random.normal(kx, (1, infeatures), dtype=jnp.float32)
        qweight = jax.random.randint(kq, (R, outfeatures),
                                     minval=jnp.iinfo(jnp.int32).min,
                                     maxval=jnp.iinfo(jnp.int32).max,
                                     dtype=jnp.int32)
        scales = jax.random.uniform(ks, (1, outfeatures), dtype=jnp.float32) * 0.1
        zeros = jax.random.uniform(kz, (1, outfeatures), dtype=jnp.float32) * 0.5
        bias = jax.random.normal(kb, (outfeatures,), dtype=jnp.float32)

        params = prepare_quant4_params(qweight, scales, zeros, bias)  # init-time prep
        y = quant4_linear_prepared(x, params)
        jax.block_until_ready(y)
        y_ref = quant4_linear_ref_np(x, qweight, scales, zeros, bias)
        np.testing.assert_allclose(np.asarray(y), y_ref, rtol=3e-4, atol=3e-4)
        assert y.shape == (1, outfeatures) and y.dtype == x.dtype

    k1, k2, k3 = jax.random.split(key, 3)
    run_case(128, 256, k1)   # tile-aligned outfeatures
    run_case(128, 200, k2)   # non-multiple-of-128 outfeatures -> padded N tail
    run_case(256, 512, k3)   # R padded to 32, 2-step grid with 256-wide tiles
    print("KERNEL_OK")
</pallas_src>

<mosaic_0001>
module attributes {stable_mosaic.version = 11 : i64} {
  func.func @_quant4_matvec_kernel(%arg0: i32, %arg1: memref<16x16xbf16, #tpu.memory_space<vmem>>, %arg2: memref<16x128xi32, #tpu.memory_space<vmem>>, %arg3: memref<1x128xf32, #tpu.memory_space<vmem>>, %arg4: memref<1x128xf32, #tpu.memory_space<vmem>>, %arg5: memref<1x128xf32, #tpu.memory_space<vmem>>) attributes {dimension_semantics = [#tpu.dimension_semantics<parallel>], iteration_bounds = array<i64: 2>, scalar_prefetch = 0 : i64, scratch_operands = 0 : i64, tpu.core_type = #tpu.core_type<tc>, window_params = [{pipeline_mode = #tpu.pipeline_mode<synchronous>, transform_indices = @transform_0, window_bounds = array<i64: 16, 16>}, {transform_indices = @transform_1, window_bounds = array<i64: 16, 128>}, {transform_indices = @transform_2, window_bounds = array<i64: 1, 128>}, {transform_indices = @transform_3, window_bounds = array<i64: 1, 128>}, {transform_indices = @transform_4, window_bounds = array<i64: 1, 128>}]} {
    %c0 = arith.constant 0 : index
    %c0_0 = arith.constant 0 : index
    %0 = vector.load %arg2[%c0, %c0_0] : memref<16x128xi32, #tpu.memory_space<vmem>>, vector<16x128xi32>
    %c0_1 = arith.constant 0 : index
    %c0_2 = arith.constant 0 : index
    %1 = vector.load %arg1[%c0_1, %c0_2] : memref<16x16xbf16, #tpu.memory_space<vmem>>, vector<16x16xbf16>
    %cst = arith.constant 0.000000e+00 : f32
    %2 = vector.broadcast %cst : f32 to vector<2x128xf32>
    %c15_i32 = arith.constant 15 : i32
    %3 = vector.broadcast %c15_i32 : i32 to vector<16x128xi32>
    %4 = arith.andi %0, %3 : vector<16x128xi32>
    %5 = arith.sitofp %4 : vector<16x128xi32> to vector<16x128xf32>
    %6 = arith.truncf %5 : vector<16x128xf32> to vector<16x128xbf16>
    %7 = vector.extract_strided_slice %1 {offsets = [0, 0], sizes = [2, 16], strides = [1, 1]} : vector<16x16xbf16> to vector<2x16xbf16>
    %cst_3 = arith.constant dense<0.000000e+00> : vector<2x128xf32>
    %8 = tpu.matmul %7, %6, %cst_3 {dimension_numbers = #tpu.dot_dimension_numbers<[1], [0], [0], [1], [0, 0, 1, 1], [], []>} : vector<2x16xbf16>, vector<16x128xbf16>, vector<2x128xf32> -> vector<2x128xf32>
    %9 = arith.addf %2, %8 : vector<2x128xf32>
    %c4_i32 = arith.constant 4 : i32
    %10 = vector.broadcast %c4_i32 : i32 to vector<16x128xi32>
    %11 = arith.shrsi %0, %10 : vector<16x128xi32>
    %c15_i32_4 = arith.constant 15 : i32
    %12 = vector.broadcast %c15_i32_4 : i32 to vector<16x128xi32>
    %13 = arith.andi %11, %12 : vector<16x128xi32>
    %14 = arith.sitofp %13 : vector<16x128xi32> to vector<16x128xf32>
    %15 = arith.truncf %14 : vector<16x128xf32> to vector<16x128xbf16>
    %16 = vector.extract_strided_slice %1 {offsets = [2, 0], sizes = [2, 16], strides = [1, 1]} : vector<16x16xbf16> to vector<2x16xbf16>
    %cst_5 = arith.constant dense<0.000000e+00> : vector<2x128xf32>
    %17 = tpu.matmul %16, %15, %cst_5 {dimension_numbers = #tpu.dot_dimension_numbers<[1], [0], [0], [1], [0, 0, 1, 1], [], []>} : vector<2x16xbf16>, vector<16x128xbf16>, vector<2x128xf32> -> vector<2x128xf32>
    %18 = arith.addf %9, %17 : vector<2x128xf32>
    %c8_i32 = arith.constant 8 : i32
    %19 = vector.broadcast %c8_i32 : i32 to vector<16x128xi32>
    %20 = arith.shrsi %0, %19 : vector<16x128xi32>
    %c15_i32_6 = arith.constant 15 : i32
    %21 = vector.broadcast %c15_i32_6 : i32 to vector<16x128xi32>
    %22 = arith.andi %20, %21 : vector<16x128xi32>
    %23 = arith.sitofp %22 : vector<16x128xi32> to vector<16x128xf32>
    %24 = arith.truncf %23 : vector<16x128xf32> to vector<16x128xbf16>
    %25 = vector.extract_strided_slice %1 {offsets = [4, 0], sizes = [2, 16], strides = [1, 1]} : vector<16x16xbf16> to vector<2x16xbf16>
    %cst_7 = arith.constant dense<0.000000e+00> : vector<2x128xf32>
    %26 = tpu.matmul %25, %24, %cst_7 {dimension_numbers = #tpu.dot_dimension_numbers<[1], [0], [0], [1], [0, 0, 1, 1], [], []>} : vector<2x16xbf16>, vector<16x128xbf16>, vector<2x128xf32> -> vector<2x128xf32>
    %27 = arith.addf %18, %26 : vector<2x128xf32>
    %c12_i32 = arith.constant 12 : i32
    %28 = vector.broadcast %c12_i32 : i32 to vector<16x128xi32>
    %29 = arith.shrsi %0, %28 : vector<16x128xi32>
    %c15_i32_8 = arith.constant 15 : i32
    %30 = vector.broadcast %c15_i32_8 : i32 to vector<16x128xi32>
    %31 = arith.andi %29, %30 : vector<16x128xi32>
    %32 = arith.sitofp %31 : vector<16x128xi32> to vector<16x128xf32>
    %33 = arith.truncf %32 : vector<16x128xf32> to vector<16x128xbf16>
    %34 = vector.extract_strided_slice %1 {offsets = [6, 0], sizes = [2, 16], strides = [1, 1]} : vector<16x16xbf16> to vector<2x16xbf16>
    %cst_9 = arith.constant dense<0.000000e+00> : vector<2x128xf32>
    %35 = tpu.matmul %34, %33, %cst_9 {dimension_numbers = #tpu.dot_dimension_numbers<[1], [0], [0], [1], [0, 0, 1, 1], [], []>} : vector<2x16xbf16>, vector<16x128xbf16>, vector<2x128xf32> -> vector<2x128xf32>
    %36 = arith.addf %27, %35 : vector<2x128xf32>
    %c16_i32 = arith.constant 16 : i32
    %37 = vector.broadcast %c16_i32 : i32 to vector<16x128xi32>
    %38 = arith.shrsi %0, %37 : vector<16x128xi32>
    %c15_i32_10 = arith.constant 15 : i32
    %39 = vector.broadcast %c15_i32_10 : i32 to vector<16x128xi32>
    %40 = arith.andi %38, %39 : vector<16x128xi32>
    %41 = arith.sitofp %40 : vector<16x128xi32> to vector<16x128xf32>
    %42 = arith.truncf %41 : vector<16x128xf32> to vector<16x128xbf16>
    %43 = vector.extract_strided_slice %1 {offsets = [8, 0], sizes = [2, 16], strides = [1, 1]} : vector<16x16xbf16> to vector<2x16xbf16>
    %cst_11 = arith.constant dense<0.000000e+00> : vector<2x128xf32>
    %44 = tpu.matmul %43, %42, %cst_11 {dimension_numbers = #tpu.dot_dimension_numbers<[1], [0], [0], [1], [0, 0, 1, 1], [], []>} : vector<2x16xbf16>, vector<16x128xbf16>, vector<2x128xf32> -> vector<2x128xf32>
    %45 = arith.addf %36, %44 : vector<2x128xf32>
    %c20_i32 = arith.constant 20 : i32
    %46 = vector.broadcast %c20_i32 : i32 to vector<16x128xi32>
    %47 = arith.shrsi %0, %46 : vector<16x128xi32>
    %c15_i32_12 = arith.constant 15 : i32
    %48 = vector.broadcast %c15_i32_12 : i32 to vector<16x128xi32>
    %49 = arith.andi %47, %48 : vector<16x128xi32>
    %50 = arith.sitofp %49 : vector<16x128xi32> to vector<16x128xf32>
    %51 = arith.truncf %50 : vector<16x128xf32> to vector<16x128xbf16>
    %52 = vector.extract_strided_slice %1 {offsets = [10, 0], sizes = [2, 16], strides = [1, 1]} : vector<16x16xbf16> to vector<2x16xbf16>
    %cst_13 = arith.constant dense<0.000000e+00> : vector<2x128xf32>
    %53 = tpu.matmul %52, %51, %cst_13 {dimension_numbers = #tpu.dot_dimension_numbers<[1], [0], [0], [1], [0, 0, 1, 1], [], []>} : vector<2x16xbf16>, vector<16x128xbf16>, vector<2x128xf32> -> vector<2x128xf32>
    %54 = arith.addf %45, %53 : vector<2x128xf32>
    %c24_i32 = arith.constant 24 : i32
    %55 = vector.broadcast %c24_i32 : i32 to vector<16x128xi32>
    %56 = arith.shrsi %0, %55 : vector<16x128xi32>
    %c15_i32_14 = arith.constant 15 : i32
    %57 = vector.broadcast %c15_i32_14 : i32 to vector<16x128xi32>
    %58 = arith.andi %56, %57 : vector<16x128xi32>
    %59 = arith.sitofp %58 : vector<16x128xi32> to vector<16x128xf32>
    %60 = arith.truncf %59 : vector<16x128xf32> to vector<16x128xbf16>
    %61 = vector.extract_strided_slice %1 {offsets = [12, 0], sizes = [2, 16], strides = [1, 1]} : vector<16x16xbf16> to vector<2x16xbf16>
    %cst_15 = arith.constant dense<0.000000e+00> : vector<2x128xf32>
    %62 = tpu.matmul %61, %60, %cst_15 {dimension_numbers = #tpu.dot_dimension_numbers<[1], [0], [0], [1], [0, 0, 1, 1], [], []>} : vector<2x16xbf16>, vector<16x128xbf16>, vector<2x128xf32> -> vector<2x128xf32>
    %63 = arith.addf %54, %62 : vector<2x128xf32>
    %c28_i32 = arith.constant 28 : i32
    %64 = vector.broadcast %c28_i32 : i32 to vector<16x128xi32>
    %65 = arith.shrsi %0, %64 : vector<16x128xi32>
    %c15_i32_16 = arith.constant 15 : i32
    %66 = vector.broadcast %c15_i32_16 : i32 to vector<16x128xi32>
    %67 = arith.andi %65, %66 : vector<16x128xi32>
    %68 = arith.sitofp %67 : vector<16x128xi32> to vector<16x128xf32>
    %69 = arith.truncf %68 : vector<16x128xf32> to vector<16x128xbf16>
    %70 = vector.extract_strided_slice %1 {offsets = [14, 0], sizes = [2, 16], strides = [1, 1]} : vector<16x16xbf16> to vector<2x16xbf16>
    %cst_17 = arith.constant dense<0.000000e+00> : vector<2x128xf32>
    %71 = tpu.matmul %70, %69, %cst_17 {dimension_numbers = #tpu.dot_dimension_numbers<[1], [0], [0], [1], [0, 0, 1, 1], [], []>} : vector<2x16xbf16>, vector<16x128xbf16>, vector<2x128xf32> -> vector<2x128xf32>
    %72 = arith.addf %63, %71 : vector<2x128xf32>
    %c0_18 = arith.constant 0 : index
    %c0_19 = arith.constant 0 : index
    %73 = vector.load %arg3[%c0_18, %c0_19] : memref<1x128xf32, #tpu.memory_space<vmem>>, vector<1x128xf32>
    %74 = vector.extract_strided_slice %72 {offsets = [0, 0], sizes = [1, 128], strides = [1, 1]} : vector<2x128xf32> to vector<1x128xf32>
    %75 = vector.extract_strided_slice %72 {offsets = [1, 0], sizes = [1, 128], strides = [1, 1]} : vector<2x128xf32> to vector<1x128xf32>
    %76 = arith.addf %74, %75 : vector<1x128xf32>
    %77 = arith.mulf %73, %76 : vector<1x128xf32>
    %c0_20 = arith.constant 0 : index
    %c0_21 = arith.constant 0 : index
    %78 = vector.load %arg4[%c0_20, %c0_21] : memref<1x128xf32, #tpu.memory_space<vmem>>, vector<1x128xf32>
    %79 = arith.addf %77, %78 : vector<1x128xf32>
    %c0_22 = arith.constant 0 : index
    %c0_23 = arith.constant 0 : index
    %80 = vector.load %arg5[%c0_22, %c0_23] : memref<1x128xf32, #tpu.memory_space<vmem>>, vector<1x128xf32>
    tpu.vector_store %arg5[%c0_22, %c0_23], %79 {strides = array<i32>} : memref<1x128xf32, #tpu.memory_space<vmem>>, vector<1x128xf32>,
    return
  }
  func.func @transform_0(%arg0: i32) -> (i32, i32) {
    %c0_i32 = arith.constant 0 : i32
    %c0_i32_0 = arith.constant 0 : i32
    %c0_i32_1 = arith.constant 0 : i32
    return %c0_i32, %c0_i32_0 : i32, i32
  }
  func.func @transform_1(%arg0: i32) -> (i32, i32) {
    %c0_i32 = arith.constant 0 : i32
    %c0_i32_0 = arith.constant 0 : i32
    return %c0_i32, %arg0 : i32, i32
  }
  func.func @transform_2(%arg0: i32) -> (i32, i32) {
    %c0_i32 = arith.constant 0 : i32
    %c0_i32_0 = arith.constant 0 : i32
    return %c0_i32, %arg0 : i32, i32
  }
  func.func @transform_3(%arg0: i32) -> (i32, i32) {
    %c0_i32 = arith.constant 0 : i32
    %c0_i32_0 = arith.constant 0 : i32
    return %c0_i32, %arg0 : i32, i32
  }
  func.func @transform_4(%arg0: i32) -> (i32, i32) {
    %c0_i32 = arith.constant 0 : i32
    %c0_i32_0 = arith.constant 0 : i32
    return %c0_i32, %arg0 : i32, i32
  }
}

</mosaic_0001>

<bundles_post_ra>
// kernel: _quant4_forward.1
= control target key start
LH: loop header
LB: loop body
LE: loop exit
PB: predicated region body
PF: predicated region fallthrough
CT: control target
= control target key end

     0   :  { %9 = vsyncpa [#allocation4], 0  ;;  %s833_s0 = inlined_call_operand.vmem [shape: bf16[16,16], index: 0, kind: input, shape index: {}]   ;;  %s834_s1 = inlined_call_operand.vmem [shape: s32[16,256], index: 1, kind: input, shape index: {}]   ;;  %s835_s2 = inlined_call_operand.vmem [shape: f32[1,256], index: 2, kind: input, shape index: {}]   ;;  %s836_s3 = inlined_call_operand.vmem [shape: f32[1,256], index: 3, kind: input, shape index: {}]   ;;  %s837_s4 = inlined_call_operand.hbm [shape: f32[1,256], index: 4, kind: output, shape index: {}]  }
   0x1   :  { %11 = vsyncpa [#allocation4 + $0x1], 0  ;;  %s716_s15 = smov 0   ;;  %s718_s16 = smov 0  }
   0x2   :  { %s720_s17 = smov 0   ;;  %s722_s18 = smov 0  }
   0x3 LB: > { %s737_s19 = sadd.s32 4294967295, %s689_s18   ;;  %s569_s20 = sadd.s32 4294967294, %s689_s18   ;;  %s689_s18 = sphi %s722_s18, %s843_s18   ;;  %s685_s17 = sphi %s720_s17, %s842_s17   ;;  %s681_s16 = sphi %s718_s16, %s841_s16   ;;  %s677_s15 = sphi %s716_s15, %s840_s15  }
   0x4   : > { %s741_s21 = sadd.s32 1, %s689_s18   ;;  %s45_s22 = sadd.s32 1, %s685_s17 }
   0x5   : > { %s42_s23 = ssub.s32 %s689_s18, %s741_s21  ;;  %p52_p0 = scmp.ne.s32.totalorder %s685_s17, %s681_s16 }
   0x6   : > { %p43_p1 = scmp.eq.s32.totalorder %s42_s23, 0  ;;  %p53_p2 = scmp.eq.s32.totalorder %s689_s18, 0 }
   0x7   : > { %p134_p3 = scmp.eq.s32.totalorder %s737_s19, 1  ;;  %p139_p4 = scmp.ne.s32.totalorder %s681_s16, %s677_s15 }
   0x8   : > { %s753_s24 = scalar_select %p43_p1, %s685_s17, %s45_s22  }
   0x9   : > { %p54_p5 = por %p53_p2, %p52_p0  ;;  %p755_p6 = por %p134_p3, %p52_p0 }
   0xa   : > { %p140_p7 = scmp.eq.s32.totalorder %s569_s20, 1  ;;  %p571_p9 = scmp.ge.s32.totalorder %s689_s18, 2 }
   0xc   : > { %p759_p8 = por %p140_p7, %p139_p4  ;;  %159 = sbr.rel (%p571_p9) target bundleno = 23 (0x17), region = 20 }
  0x11   : > { %162 = sbr.rel (!%p54_p5) target bundleno = 23 (0x17), region = 24  ;;  %s164_s27 = sand.u32 (%p54_p5), 1, %s685_s17  }
  0x12   : > { %s573_s28 = sshll.u32 (%p54_p5), %s689_s18, 3  ;;  %s572_s29 = sshll.u32 (%p54_p5), %s164_s27, 4 }
  0x13   : > { %s168_s6 = scalar_lea.vmem (%p54_p5), %s834_s1, %s573_s28  ;;  %s166_s7 = scalar_lea.vmem (%p54_p5), [#allocation2], %s572_s29 }
  0x14   : > { %v199_v0 = vld [vmem:[%s168_s6] sm:$0xff] (%p54_p5)  ;;  %v201_v1 = vld [vmem:[%s168_s6 + $0x10] sm:$0xff] (%p54_p5) }
  0x15   : > { %200 = vst [vmem:[%s166_s7] sm:$0xff] (%p54_p5), %v199_v0 }
  0x16   : > { %202 = vst [vmem:[%s166_s7 + $0x8] sm:$0xff] %v201_v1 }
  0x17 PF: > { %p574_p10 = scmp.ge.s32.totalorder %s689_s18, 1  ;;  %p219_p11 = scmp.lt.s32.totalorder %s689_s18, 3 }
  0x19   : > { %p220_p12 = pnand %p574_p10, %p219_p11 }
  0x1a   : > { %s774_s8 = sand.u32 (!%p220_p12), 1, %s681_s16   ;;  %p256_p13 = scmp.lt.s32.totalorder (!%p220_p12), %s737_s19, 1 }
  0x1b   : > { %223 = sbr.rel (%p220_p12) target bundleno = 208 (0xd0), region = 70  ;;  %s575_s11 = sshll.u32 (!%p220_p12), %s774_s8, 4 }
  0x1c   : > { %s228_s12 = scalar_lea.vmem (!%p220_p12), [#allocation2], %s575_s11  ;;  %s486_s7 = scalar_lea.hbm (!%p220_p12), %s837_s4, %s737_s19 }
  0x1d   : > { %s255_s9 = scalar_lea.vmem (!%p220_p12), [#allocation3], %s774_s8  ;;  %s490_s11 = sshll.u32 (!%p220_p12), %s486_s7, 4  ;;  %s491_s11 = int_to_ptr.hbm [resolvable:$true] %s490_s11 }
  0x1e   : > { %s488_s10 = sshll.u32 (!%p220_p12), %s255_s9, 4  ;;  %s641_s13 = sshra.s32 (!%p220_p12), %s491_s11, 4  ;;  %s489_s10 = int_to_ptr.vmem [resolvable:$true] %s488_s10  ;;  %s642_s13 = int_to_ptr.hbm [resolvable:$true] %s641_s13 }
  0x1f   : > { %s643_s14 = scalar_lea.hbm (!%p220_p12), %s642_s13, 1  ;;  %s647_s22 = scalar_lea.hbm (!%p220_p12), %s837_s4, 2 }
  0x20   : > { %v265_v2 = vld [vmem:[%s833_s0] sm:$0xf]  ;;  %v264_v5 = vld [vmem:[%s228_s12 + $0x8] sm:$0xff]  ;;  %vm283_vm0 = vcmask 130048   ;;  %v266_v55 = vld [vmem:[%s833_s0 + $0x4] sm:$0xf]  ;;  %p644_p0 = scmp.ne.s32.totalorder %s642_s13, %s643_s14  ;;  %p648_p3 = scmp.lt.s32.totalorder %s642_s13, %s837_s4 }
  0x21   : > { %v280_v3 = vunpack.c.l.b16 %v265_v2  ;;  %v263_v4 = vld [vmem:[%s228_s12] sm:$0xff]  ;;  %v268_v8 = vand.u32 15, %v264_v5  ;;  %v273_v10 = vshra.s32 %v264_v5, 4  ;;  %v317_v12 = vshra.s32 %v264_v5, 8  ;;  %s257_s20 = scalar_select %p256_p13, %s737_s19, 1 }
  0x22   : > { %v267_v7 = vand.u32 15, %v263_v4  ;;  %v272_v9 = vshra.s32 %v263_v4, 4  ;;  %v316_v11 = vshra.s32 %v263_v4, 8  ;;  %v341_v13 = vshra.s32 %v263_v4, 12  ;;  %s478_s12 = scalar_lea.sflag [#allocation4], %s774_s8  ;;  %p645_p1 = pnand %p644_p0, %p755_p6 }
  0x23   : > { %v281_v6 = vpack.c.b16 %v280_v3, %v280_v3  ;;  %v342_v14 = vshra.s32 %v264_v5, 12  ;;  %v270_v16 = vcvt.s32.f32 %v268_v8  ;;  %v275_v18 = vand.u32 15, %v273_v10  ;;  %s258_s27 = scalar_lea.vmem %s835_s2, %s257_s20  ;;  %s261_s30 = scalar_lea.vmem %s836_s3, %s257_s20 }
  0x24   : > { %v269_v15 = vcvt.s32.f32 %v267_v7  ;;  %v274_v17 = vand.u32 15, %v272_v9  ;;  %v318_v19 = vand.u32 15, %v316_v11  ;;  %v319_v20 = vand.u32 15, %v317_v12  ;;  %p646_p2 = pneg %p645_p1  ;;  %p649_p4 = scmp.lt.s32.totalorder %s647_s22, %s643_s14 }
  0x25   : > { %v343_v21 = vand.u32 15, %v341_v13  ;;  %v344_v22 = vand.u32 15, %v342_v14  ;;  %v277_v25 = vcvt.s32.f32 %v275_v18  ;;  %v282_v26 = vrot.slane %v281_v6, 1 }
  0x26   : > { %v271_v23 = vpack.c.bf16 %v270_v16, %v269_v15  ;;  %v276_v24 = vcvt.s32.f32 %v274_v17  ;;  %v320_v27 = vcvt.s32.f32 %v318_v19  ;;  %v321_v28 = vcvt.s32.f32 %v319_v20  ;;  %p650_p5 = por %p649_p4, %p648_p3 }
  0x27   : > { %v345_v29 = vcvt.s32.f32 %v343_v21  ;;  %v346_v30 = vcvt.s32.f32 %v344_v22  ;;  %v323_v32 = vrot.slane %v281_v6, 2  ;;  %v348_v33 = vrot.slane %v281_v6, 3 }
  0x28   : > { %310 = vmatpush.bf16.msra.mxu1 %v271_v23  ;;  %v278_v31 = vpack.c.bf16 %v277_v25, %v276_v24  ;;  %v418_v34 = vshra.s32 %v263_v4, 24  ;;  %v322_v35 = vpack.c.bf16 %v321_v28, %v320_v27  ;;  %v419_v37 = vshra.s32 %v264_v5, 24  ;;  %p651_p7 = pnand %p650_p5, %p646_p2 }
  0x29   : > { %v347_v36 = vpack.c.bf16 %v346_v30, %v345_v29  ;;  %v366_v38 = vshra.s32 %v263_v4, 16  ;;  %v367_v40 = vshra.s32 %v264_v5, 16  ;;  %v583_v41 = vshrl.u32 %v263_v4, 28  ;;  %v474_v29 = vld [vmem:[%s261_s30] sm:$0x1] }
  0x2a   : > { %294 = vmatpush.bf16.msra.mxu0 %v278_v31  ;;  %v420_v39 = vand.u32 15, %v418_v34  ;;  %v584_v42 = vshrl.u32 %v264_v5, 28  ;;  %334 = vmatpush.bf16.msra.mxu2 %v322_v35  ;;  %v421_v43 = vand.u32 15, %v419_v37  ;;  %v390_v45 = vshra.s32 %v263_v4, 20 }
  0x2b   : > { %359 = vmatpush.bf16.msra.mxu3 %v347_v36  ;;  %v368_v44 = vand.u32 15, %v366_v38  ;;  %v391_v46 = vshra.s32 %v264_v5, 20  ;;  %577 = vmatmul.msk.bf16.vlgmr.msra.gmra.mxu1 %vm283_vm0, %v265_v2  ;;  %v369_v48 = vand.u32 15, %v367_v40  ;;  %v447_v49 = vcvt.s32.f32 %v583_v41 }
  0x2c   : > { %v422_v47 = vcvt.s32.f32 %v420_v39  ;;  %v448_v50 = vcvt.s32.f32 %v584_v42  ;;  %v423_v51 = vcvt.s32.f32 %v421_v43  ;;  %v392_v53 = vand.u32 15, %v390_v45 }
  0x2d   : > { %576 = vmatmul.msk.bf16.vlgmr.msra.gmra.mxu0 %vm283_vm0, %v282_v26  ;;  %v370_v52 = vcvt.s32.f32 %v368_v44  ;;  %v393_v54 = vand.u32 15, %v391_v46  ;;  %578 = vmatmul.msk.bf16.vlgmr.msra.gmra.mxu2 %vm283_vm0, %v323_v32  ;;  %v371_v56 = vcvt.s32.f32 %v369_v48  ;;  %v398_v62 = vunpack.c.l.b16 %v266_v55  ;;  %v468_v26 = vld [vmem:[%s258_s27] sm:$0x1] }
  0x2e   : > { %579 = vmatmul.msk.bf16.vlgmr.msra.gmra.mxu3 %vm283_vm0, %v348_v33  ;;  %v449_v57 = vpack.c.bf16 %v448_v50, %v447_v49  ;;  %v424_v58 = vpack.c.bf16 %v423_v51, %v422_v47  ;;  %v394_v59 = vcvt.s32.f32 %v392_v53 }
  0x2f   : > { %v395_v60 = vcvt.s32.f32 %v393_v54  ;;  %v372_v61 = vpack.c.bf16 %v371_v56, %v370_v52  ;;  %v399_v0 = vpack.c.b16 %v398_v62, %v398_v62 }
  0x30   : > { %461 = vmatpush.bf16.msrb.mxu3 %v449_v57  ;;  %436 = vmatpush.bf16.msrb.mxu2 %v424_v58 }
  0x31   : > { %v396_v63 = vpack.c.bf16 %v395_v60, %v394_v59  ;;  %383 = vmatpush.bf16.msrb.mxu0 %v372_v61  ;;  %v400_v1 = vrot.slane %v399_v0, 1  ;;  %v425_v2 = vrot.slane %v399_v0, 2  ;;  %v450_v3 = vrot.slane %v399_v0, 3 }
  0x33   : > { %411 = vmatpush.bf16.msrb.mxu1 %v396_v63 }
  0x3b   : > { %581 = vmatmul.msk.bf16.vlgmr.msrb.gmra.mxu1 %vm283_vm0, %v400_v1 }
  0x3d   : > { %580 = vmatmul.msk.bf16.vlgmr.msrb.gmra.mxu0 %vm283_vm0, %v266_v55  ;;  %582 = vmatmul.msk.bf16.vlgmr.msrb.gmra.mxu2 %vm283_vm0, %v425_v2 }
  0x3e   : > { %585 = vmatmul.msk.bf16.vlgmr.msrb.gmra.mxu3 %vm283_vm0, %v450_v3 }
  0xa8   : > { %v312_v4 = vpop.f32.mrf.mxu1 }
  0xaa   : > { %v296_v5 = vpop.f32.mrf.mxu0 }
  0xab   : > { %v313_v10 = vadd.f32 %v312_v4, %v296_v5 }
  0xb0   : > { %v314_v6 = vpop.f32.mrf.mxu1  ;;  %v336_v7 = vpop.f32.mrf.mxu2 }
  0xb1   : > { %v361_v8 = vpop.f32.mrf.mxu3  ;;  %v340_v11 = vadd.f32 %v336_v7, %v313_v10 }
  0xb2   : > { %v298_v9 = vpop.f32.mrf.mxu0 }
  0xb3   : > { %v365_v14 = vadd.f32 %v361_v8, %v340_v11 }
  0xb8   : > { %v338_v12 = vpop.f32.mrf.mxu2  ;;  %v413_v13 = vpop.f32.mrf.mxu1 }
  0xb9   : > { %v363_v15 = vpop.f32.mrf.mxu3 }
  0xba   : > { %v385_v16 = vpop.f32.mrf.mxu0 }
  0xbb   : > { %v389_v17 = vadd.f32 %v385_v16, %v365_v14 }
  0xbd   : > { %v417_v18 = vadd.f32 %v413_v13, %v389_v17 }
  0xc0   : > { %v415_v19 = vpop.f32.mrf.mxu1  ;;  %v438_v20 = vpop.f32.mrf.mxu2 }
  0xc1   : > { %v442_v21 = vadd.f32 %v438_v20, %v417_v18  ;;  %v463_v22 = vpop.f32.mrf.mxu3 }
  0xc2   : > { %v387_v23 = vpop.f32.mrf.mxu0 }
  0xc3   : > { %v467_v24 = vadd.f32 %v463_v22, %v442_v21 }
  0xc5   : > { %v470_v25 = vrot.slane %v467_v24, 1 }
  0xc7   : > { %v472_v27 = vadd.f32 %v470_v25, %v467_v24 }
  0xc8   : > { %v440_v28 = vpop.f32.mrf.mxu2 }
  0xc9   : > { %v473_v30 = vmul.f32 %v472_v27, %v468_v26  ;;  %v465_v31 = vpop.f32.mrf.mxu3 }
  0xcb   : > { %v475_v32 = vadd.f32 %v474_v29, %v473_v30 }
  0xcd   : > { %476 = vst [vmem:[%s255_s9] sm:$0x1] %v475_v32 }
  0xce   : > { %654 = shalt.err (!%p651_p7)
}
  0xcf   : > { %588 = dma.vmem_to_hbm [thread:$0]  (%p755_p6), %s489_s10, 16, %s491_s11, %s478_s12  }
  0xd0 PF: > { %s502_s8 = sand.u32 1, %s677_s15   ;;  %p591_p10 = pnand %p571_p9, %p759_p8 }
  0xd1   : > { %s503_s28 = scalar_lea.sflag [#allocation4], %s502_s8 }
  0xd2   : > { %p592_p11 = pneg %p591_p10 }
  0xd4   : > { %672 = dma.done.wait (%p592_p11), %s503_s28, 16  }
  0xd5   : > { %674 = vsyncadd (%p592_p11), %s503_s28, 4294967280  ;;  %p14_p12 = scmp.ge.s32.totalorder %s741_s21, 4   ;;  %s840_s15 = smov %s681_s16 }
  0xd6   : > { %s841_s16 = smov %s685_s17  ;;  %s842_s17 = smov %s753_s24 }
  0xd7   : > { %s843_s18 = smov %s741_s21  ;;  %16 = sbr.rel (!%p14_p12) target bundleno = 3 (0x3), region = 120 }
  0xdc   :  { %508 = vsyncpa [#allocation4], 1 }
  0xdd   :  { %510 = vsyncpa [#allocation4 + $0x1], 1 }

</bundles_post_ra>
